<compile_context>
chip_gen: v7x
topology: tpu7x:2x2x1
jax: 0.10.0
libtpu: 0.0.40
codegen_flags: <defaults>
</compile_context>

<pallas_src>
import functools
import math

import jax
import jax.numpy as jnp
from jax import lax
from jax.experimental import pallas as pl
from jax.experimental.pallas import tpu as pltpu


# ---------------- RMS norm kernel ----------------
def _rms_kernel(x_ref, s_ref, o_ref, *, eps):
    x = x_ref[...].astype(jnp.float32)                  # (tm, D) tile
    ms = jnp.mean(x * x, axis=-1, keepdims=True)        # cross-lane reduce (XLU)
    inv = lax.rsqrt(ms + eps)                           # EUP slot, not a VPU divide
    o_ref[...] = (s_ref[...] * x * inv).astype(o_ref.dtype)


def _round_up(v, m):
    return (v + m - 1) // m * m


def _pick_token_tile(n, d, itemsize):
    """Pick the token-tile height tm (8-aligned) for a (n, d) activation stream."""
    # Target ~2 MiB input tiles so per-step pipeline overhead is amortized, while
    # keeping the full working set (in + out tiles, double-buffered, plus f32
    # intermediates of the in-kernel upcast) inside a 12 MiB budget.  That budget
    # is safe on every generation (v5e scoped default 16 MiB, v6e/v7x 32 MiB).
    target_tile_bytes = 2 * 1024 * 1024
    per_row_bytes = d * (2 * 2 * itemsize + 2 * 4)      # (in+out)x2 bufs + f32 temps
    budget_bytes = 12 * 1024 * 1024
    cap_budget = max(8, budget_bytes // per_row_bytes)
    cap_target = max(8, target_tile_bytes // (itemsize * d))
    tm = min(cap_budget, cap_target, 2048)
    tm = max(8, (tm // 8) * 8)                          # sublane (8) alignment

    if n <= 8:
        return max(n, 1)                                # single block == full array
    # Keep >= ~4 grid steps so both v7x TensorCores get work and the
    # double-buffer pipeline overlaps, without shrinking below one sublane group.
    tm_for_steps = _round_up(pl.cdiv(n, 4), 8)
    return min(tm, max(8, tm_for_steps))


def rms_norm(x, scale, *, eps=1e-5):
    """scale * x * rsqrt(mean(x^2, -1) + eps) over the last axis of x."""
    orig_shape = x.shape
    d = orig_shape[-1]
    n = math.prod(orig_shape[:-1]) if len(orig_shape) > 1 else 1
    x2d = x.reshape(n, d)

    tm = _pick_token_tile(n, d, jnp.dtype(x.dtype).itemsize)
    grid = pl.cdiv(n, tm)   # boundary block is masked by Pallas -> no pad/slice passes

    out = pl.pallas_call(
        functools.partial(_rms_kernel, eps=eps),
        out_shape=jax.ShapeDtypeStruct((n, d), x.dtype),
        grid=(grid,),
        in_specs=[
            pl.BlockSpec((tm, d), lambda i: (i, 0)),    # token-tiled activation stream
            pl.BlockSpec((1, d), lambda i: (0, 0)),     # scale broadcast to every tile
        ],
        out_specs=pl.BlockSpec((tm, d), lambda i: (i, 0)),
        compiler_params=pltpu.CompilerParams(
            dimension_semantics=("parallel",)),         # megacore-shardable grid axis
    )(x2d, scale.reshape(1, d).astype(jnp.float32))

    return out.reshape(orig_shape)


# ---------------- pure-JAX reference ----------------
def rms_ref(x, scale, eps=1e-5):
    return scale * x / jnp.sqrt(jnp.mean(x * x, axis=-1, keepdims=True) + eps)


if __name__ == "__main__":
    key = jax.random.PRNGKey(0)
    k_scale, k_x, k_x2, k_x3 = jax.random.split(key, 4)

    # Shapes consistent with the module: [batch, seq, vinput].
    B, S, D = 2, 128, 128
    scale = jax.random.normal(k_scale, (D,), jnp.float32)   # torch.randn(vinput)
    x = jax.random.normal(k_x, (B, S, D), jnp.float32)

    out = rms_norm(x, scale)
    jax.block_until_ready(out)
    assert out.shape == x.shape and out.dtype == x.dtype
    assert jnp.allclose(out, rms_ref(x, scale), atol=1e-5, rtol=1e-5)

    # Ragged token count exercises the masked boundary block (no pad/slice path).
    x2 = jax.random.normal(k_x2, (3, 5, D), jnp.float32)
    out2 = rms_norm(x2, scale)
    jax.block_until_ready(out2)
    assert jnp.allclose(out2, rms_ref(x2, scale), atol=1e-5, rtol=1e-5)

    # bf16 activations: dtype-aware tile sizing, f32 math inside the kernel.
    x3 = jax.random.normal(k_x3, (2, 200, D), jnp.float32).astype(jnp.bfloat16)
    out3 = rms_norm(x3, scale)
    jax.block_until_ready(out3)
    assert out3.dtype == jnp.bfloat16
    assert jnp.allclose(out3.astype(jnp.float32),
                        rms_ref(x3.astype(jnp.float32), scale),
                        atol=3e-2, rtol=3e-2)

    print("KERNEL_OK")
</pallas_src>

<mosaic_0001>
module attributes {stable_mosaic.version = 11 : i64} {
  func.func @_rms_kernel(%arg0: i32, %arg1: memref<64x128xf32, #tpu.memory_space<vmem>>, %arg2: memref<1x128xf32, #tpu.memory_space<vmem>>, %arg3: memref<64x128xf32, #tpu.memory_space<vmem>>) attributes {dimension_semantics = [#tpu.dimension_semantics<parallel>], iteration_bounds = array<i64: 4>, scalar_prefetch = 0 : i64, scratch_operands = 0 : i64, tpu.core_type = #tpu.core_type<tc>, window_params = [{transform_indices = @transform_0, window_bounds = array<i64: 64, 128>}, {pipeline_mode = #tpu.pipeline_mode<synchronous>, transform_indices = @transform_1, window_bounds = array<i64: 1, 128>}, {transform_indices = @transform_2, window_bounds = array<i64: 64, 128>}]} {
    %c0 = arith.constant 0 : index
    %c0_0 = arith.constant 0 : index
    %0 = vector.load %arg1[%c0, %c0_0] : memref<64x128xf32, #tpu.memory_space<vmem>>, vector<64x128xf32>
    %1 = arith.mulf %0, %0 : vector<64x128xf32>
    %cst = arith.constant dense<0.000000e+00> : vector<64xf32>
    %2 = vector.multi_reduction <add>, %1, %cst [1] : vector<64x128xf32> to vector<64xf32>
    %3 = vector.shape_cast %2 : vector<64xf32> to vector<64x1xf32>
    %cst_1 = arith.constant 1.280000e+02 : f32
    %4 = vector.broadcast %cst_1 : f32 to vector<64x1xf32>
    %5 = arith.divf %3, %4 : vector<64x1xf32>
    %cst_2 = arith.constant 9.99999974E-6 : f32
    %6 = vector.broadcast %cst_2 : f32 to vector<64x1xf32>
    %7 = arith.addf %5, %6 : vector<64x1xf32>
    %8 = math.rsqrt %7 : vector<64x1xf32>
    %c0_3 = arith.constant 0 : index
    %c0_4 = arith.constant 0 : index
    %9 = vector.load %arg2[%c0_3, %c0_4] : memref<1x128xf32, #tpu.memory_space<vmem>>, vector<1x128xf32>
    %10 = vector.broadcast %9 : vector<1x128xf32> to vector<64x128xf32>
    %11 = arith.mulf %10, %0 : vector<64x128xf32>
    %12 = vector.broadcast %8 : vector<64x1xf32> to vector<64x128xf32>
    %13 = arith.mulf %11, %12 : vector<64x128xf32>
    %c0_5 = arith.constant 0 : index
    %c0_6 = arith.constant 0 : index
    %14 = vector.load %arg3[%c0_5, %c0_6] : memref<64x128xf32, #tpu.memory_space<vmem>>, vector<64x128xf32>
    tpu.vector_store %arg3[%c0_5, %c0_6], %13 {strides = array<i32>} : memref<64x128xf32, #tpu.memory_space<vmem>>, vector<64x128xf32>,
    return
  }
  func.func @transform_0(%arg0: i32) -> (i32, i32) {
    %c0_i32 = arith.constant 0 : i32
    %c0_i32_0 = arith.constant 0 : i32
    return %arg0, %c0_i32 : i32, i32
  }
  func.func @transform_1(%arg0: i32) -> (i32, i32) {
    %c0_i32 = arith.constant 0 : i32
    %c0_i32_0 = arith.constant 0 : i32
    %c0_i32_1 = arith.constant 0 : i32
    return %c0_i32, %c0_i32_0 : i32, i32
  }
  func.func @transform_2(%arg0: i32) -> (i32, i32) {
    %c0_i32 = arith.constant 0 : i32
    %c0_i32_0 = arith.constant 0 : i32
    return %arg0, %c0_i32 : i32, i32
  }
}

</mosaic_0001>

<bundles_post_ra>
// kernel: tpu_custom_call.1
= control target key start
LH: loop header
LB: loop body
LE: loop exit
PB: predicated region body
PF: predicated region fallthrough
CT: control target
= control target key end

     0   :  { %7 = vsyncpa [#allocation3], 0  ;;  %s713_s0 = inlined_call_operand.hbm [shape: f32[256,128], index: 0, kind: input, shape index: {}]   ;;  %s714_s1 = inlined_call_operand.vmem [shape: f32[1,128], index: 1, kind: input, shape index: {}]   ;;  %s715_s2 = inlined_call_operand.hbm [shape: f32[256,128], index: 2, kind: output, shape index: {}]  }
   0x1   :  { %9 = vsyncpa [#allocation3 + $0x1], 0 }
   0x2   :  { %10 = vsyncpa [#allocation4], 0 }
   0x3   :  { %12 = vsyncpa [#allocation4 + $0x1], 0  ;;  %s541_s9 = smov 0   ;;  %s543_s10 = smov 0  }
   0x4   :  { %s545_s11 = smov 0   ;;  %s547_s12 = smov 0  }
   0x5 LB: > { %s562_s13 = sadd.s32 4294967295, %s518_s12   ;;  %s339_s14 = sadd.s32 4294967294, %s518_s12   ;;  %s518_s12 = sphi %s547_s12, %s727_s12   ;;  %s514_s11 = sphi %s545_s11, %s726_s11   ;;  %s510_s10 = sphi %s543_s10, %s725_s10   ;;  %s506_s9 = sphi %s541_s9, %s724_s9  }
   0x6   : > { %s566_s15 = sadd.s32 1, %s518_s12   ;;  %s25_s16 = sadd.s32 1, %s514_s11 }
   0x7   : > { %s22_s17 = ssub.s32 %s518_s12, %s566_s15  ;;  %p32_p0 = scmp.ne.s32.totalorder %s514_s11, %s510_s10 }
   0x8   : > { %p23_p1 = scmp.eq.s32.totalorder %s22_s17, 0  ;;  %p33_p2 = scmp.eq.s32.totalorder %s518_s12, 0 }
   0x9   : > { %p38_p3 = scmp.ne.s32.totalorder %s510_s10, %s506_s9  ;;  %p39_p4 = scmp.eq.s32.totalorder %s562_s13, 0 }
   0xa   : > { %s578_s18 = scalar_select %p23_p1, %s514_s11, %s25_s16  }
   0xb   : > { %p580_p5 = por %p33_p2, %p32_p0  ;;  %p584_p6 = por %p39_p4, %p38_p3 }
   0xc   : > { %p83_p7 = scmp.eq.s32.totalorder %s562_s13, 3  ;;  %p89_p8 = scmp.eq.s32.totalorder %s339_s14, 3 }
   0xd   : > { %p368_p9 = scmp.lt.s32.totalorder %s518_s12, 4  ;;  %s112_s23 = sand.u32 1, %s514_s11  }
   0xe   : > { %p590_p10 = por %p83_p7, %p32_p0  ;;  %p594_p11 = por %p89_p8, %p38_p3 }
   0xf   : > { %s354_s24 = sshll.u32 %s518_s12, 10  ;;  %s342_s25 = sshll.u32 %s112_s23, 6 }
  0x10   : > { %s719_s21 = scalar_select %p590_p10, 1, 0 }
  0x11   : > { %s720_s22 = scalar_select %p594_p11, 1, 0 }
  0x12   : > { %s603_s28 = scalar_lea.hbm %s713_s0, %s354_s24  ;;  %s116_s29 = scalar_lea.vmem [#allocation2], %s342_s25 }
  0x13   : > { %s123_s30 = sshll.u32 %s116_s29, 4  ;;  %p607_p12 = pnand %p368_p9, %p580_p5  ;;  %s611_s30 = int_to_ptr.vmem [resolvable:$true] %s123_s30 }
  0x14   : > { %s613_s4 = scalar_lea.sflag [#allocation3], %s112_s23  ;;  %s422_s5 = scalar_lea.hbm %s603_s28, 1024 }
  0x15   : > { %p423_p13 = scmp.ne.s32.totalorder %s603_s28, %s422_s5  ;;  %p424_p0 = pneg %p607_p12 }
  0x16   : > { %s427_s8 = scalar_lea.hbm %s713_s0, 4096  ;;  %p428_p3 = scmp.lt.u32.totalorder %s603_s28, %s713_s0 }
  0x17   : > { %p425_p1 = pnand %p424_p0, %p423_p13  ;;  %p429_p4 = scmp.lt.u32.totalorder %s427_s8, %s422_s5 }
  0x18   : > { %p431_p7 = scmp.lt.u32.totalorder %s422_s5, %s603_s28 }
  0x19   : > { %p426_p2 = pneg %p425_p1  ;;  %p430_p5 = por %p429_p4, %p428_p3 }
  0x1b   : > { %p432_p8 = por %p431_p7, %p430_p5 }
  0x1d   : > { %p433_p9 = pnand %p432_p8, %p426_p2 }
  0x1f   : > { %436 = shalt.err (!%p433_p9)
}
  0x20   : > { %s437_s17 = scalar_lea.vmem %s611_s30, 1024  ;;  %s520_s19 = smov [#allocation2]  }
  0x21   : > { %p438_p13 = scmp.ne.s32.totalorder %s611_s30, %s437_s17  ;;  %s442_s23 = sshll.u32 %s520_s19, 4  ;;  %s443_s23 = int_to_ptr.vmem [resolvable:$false] %s442_s23 }
  0x22   : > { %s444_s24 = scalar_lea.vmem %s443_s23, 2048  ;;  %p445_p10 = scmp.lt.s32.totalorder %s611_s30, %s443_s23 }
  0x23   : > { %p440_p1 = pnand %p438_p13, %p424_p0  ;;  %p446_p3 = scmp.lt.s32.totalorder %s444_s24, %s437_s17 }
  0x25   : > { %p441_p11 = pneg %p440_p1  ;;  %p447_p4 = por %p446_p3, %p445_p10 }
  0x27   : > { %p448_p5 = pnand %p447_p4, %p441_p11 }
  0x29   : > { %451 = shalt.err (!%p448_p5)
}
  0x2a   : > { %s521_s25 = smov 128   ;;  %s522_s26 = smov 8  }
  0x2b   : > { %363 = dma.hbm_to_vmem [thread:$0]  (!%p607_p12), %s603_s28, 1024, %s611_s30, %s613_s4, %s521_s25, %s521_s25, %s522_s26  }
  0x2c   : > { %p345_p0 = scmp.ge.s32.totalorder %s518_s12, 1  ;;  %p131_p2 = scmp.lt.s32.totalorder %s518_s12, 5 }
  0x2e   : > { %p132_p7 = pnand %p345_p0, %p131_p2 }
  0x2f   : > { %s644_s27 = sand.u32 (!%p132_p7), 1, %s510_s10  }
  0x30   : > { %135 = sbr.rel (%p132_p7) target bundleno = 246 (0xf6), region = 28  ;;  %s346_s29 = sshll.u32 (!%p132_p7), %s644_s27, 6 }
  0x31   : > { %s138_s5 = scalar_lea.sflag (!%p132_p7), [#allocation3], %s644_s27  ;;  %s141_s6 = scalar_lea.vmem (!%p132_p7), [#allocation2], %s346_s29 }
  0x37   : > { %497 = dma.done.wait (%p584_p6), %s138_s5, 1024  }
  0x38   : > { %499 = vsyncadd (%p584_p6), %s138_s5, 4294966272  ;;  %v166_v0 = vld [vmem:[%s141_s6 + $0x10] sm:$0xff]  ;;  %v164_v1 = vld [vmem:[%s141_s6] sm:$0xff]  ;;  %s161_s30 = scalar_lea.vmem [#allocation5], %s346_s29  ;;  %s355_s3 = sshll.u32 %s562_s13, 10 }
  0x39   : > { %v174_v2 = vmul.f32 %v166_v0, %v166_v0  ;;  %v172_v3 = vmul.f32 %v164_v1, %v164_v1  ;;  %v167_v4 = vld [vmem:[%s141_s6 + $0x18] sm:$0xff]  ;;  %v165_v5 = vld [vmem:[%s141_s6 + $0x8] sm:$0xff]  ;;  %v168_v9 = vld [vmem:[%s141_s6 + $0x20] sm:$0xff]  ;;  %s266_s4 = sshll.u32 %s161_s30, 4  ;;  %s668_s14 = scalar_lea.hbm %s715_s2, %s355_s3  ;;  %s670_s4 = int_to_ptr.vmem [resolvable:$true] %s266_s4 }
  0x3a   : > { %v175_v6 = vmul.f32 %v167_v4, %v167_v4  ;;  %v173_v7 = vmul.f32 %v165_v5, %v165_v5  ;;  %v169_v8 = vld [vmem:[%s141_s6 + $0x28] sm:$0xff]  ;;  %v176_v11 = vmul.f32 %v168_v9, %v168_v9  ;;  %v171_v12 = vld [vmem:[%s141_s6 + $0x38] sm:$0xff]  ;;  %v654_v13 = vld [vmem:[%s141_s6 + $0x30] sm:$0xff]  ;;  %s253_s13 = scalar_lea.sflag [#allocation4], %s644_s27  ;;  %s452_s16 = scalar_lea.vmem %s670_s4, 1024 }
  0x3b   : > { %184 = vadd.xlane.f32.xlu1 %v174_v2  ;;  %180 = vadd.xlane.f32.xlu0 %v172_v3  ;;  %v177_v10 = vmul.f32 %v169_v8, %v169_v8  ;;  %v179_v14 = vmul.f32 %v171_v12, %v171_v12  ;;  %v178_v15 = vmul.f32 %v654_v13, %v654_v13  ;;  %v348_v30 = vld [vmem:[%s714_s1] ss:$0 sm:$0xff]  ;;  %p453_p6 = scmp.ne.s32.totalorder %s670_s4, %s452_s16  ;;  %p722_p10 = scmp.ne.s32.totalorder %s719_s21, 0 }
  0x3c   : > { %v230_v35 = vmul.f32 %v348_v30, %v166_v0  ;;  %v228_v38 = vmul.f32 %v348_v30, %v164_v1  ;;  %v231_v45 = vmul.f32 %v348_v30, %v167_v4  ;;  %v229_v47 = vmul.f32 %v348_v30, %v165_v5  ;;  %s523_s17 = smov [#allocation5]  }
  0x3d   : > { %v233_v51 = vmul.f32 %v348_v30, %v169_v8  ;;  %v232_v53 = vmul.f32 %v348_v30, %v168_v9  ;;  %v235_v57 = vmul.f32 %v348_v30, %v171_v12  ;;  %v234_v59 = vmul.f32 %v348_v30, %v654_v13  ;;  %p454_p11 = pnand %p453_p6, %p722_p10  ;;  %s456_s19 = sshll.u32 %s523_s17, 4  ;;  %s457_s19 = int_to_ptr.vmem [resolvable:$false] %s456_s19 }
  0x3e   : > { %s458_s23 = scalar_lea.vmem %s457_s19, 2048  ;;  %p459_p8 = scmp.lt.s32.totalorder %s670_s4, %s457_s19 }
  0x3f   : > { %186 = vadd.xlane.f32.xlu1 %v175_v6  ;;  %182 = vadd.xlane.f32.xlu0 %v173_v7  ;;  %p455_p12 = pneg %p454_p11  ;;  %p460_p9 = scmp.lt.s32.totalorder %s458_s23, %s452_s16 }
  0x41   : > { %p461_p13 = por %p460_p9, %p459_p8 }
  0x43   : > { %190 = vadd.xlane.f32.xlu1 %v177_v10  ;;  %188 = vadd.xlane.f32.xlu0 %v176_v11  ;;  %p462_p1 = pnand %p461_p13, %p455_p12 }
  0x47   : > { %194 = vadd.xlane.f32.xlu1 %v179_v14  ;;  %192 = vadd.xlane.f32.xlu0 %v178_v15 }
  0xc8   : > { %v185_v16 = vpop.xlane.xlu1 %184  ;;  %v181_v17 = vpop.xlane.xlu0 %180 }
  0xc9   : > { %v199_v18 = vmul.f32 0.0078125, %v185_v16  ;;  %v197_v19 = vmul.f32 0.0078125, %v181_v17 }
  0xcb   : > { %v207_v20 = vadd.f32 1e-05, %v199_v18  ;;  %v205_v21 = vadd.f32 1e-05, %v197_v19 }
  0xcc   : > { %v187_v22 = vpop.xlane.xlu1 %186  ;;  %v183_v23 = vpop.xlane.xlu0 %182 }
  0xcd   : > { %406 = vrsqrt.f32 %v207_v20  ;;  %v200_v24 = vmul.f32 0.0078125, %v187_v22  ;;  %v198_v25 = vmul.f32 0.0078125, %v183_v23 }
  0xce   : > { %408 = vrsqrt.f32 %v205_v21 }
  0xcf   : > { %v208_v26 = vadd.f32 1e-05, %v200_v24  ;;  %v206_v27 = vadd.f32 1e-05, %v198_v25 }
  0xd0   : > { %v191_v28 = vpop.xlane.xlu1 %190  ;;  %v189_v29 = vpop.xlane.xlu0 %188 }
  0xd1   : > { %410 = vrsqrt.f32 %v208_v26  ;;  %v202_v31 = vmul.f32 0.0078125, %v191_v28  ;;  %v201_v32 = vmul.f32 0.0078125, %v189_v29 }
  0xd2   : > { %412 = vrsqrt.f32 %v206_v27 }
  0xd3   : > { %v210_v33 = vadd.f32 1e-05, %v202_v31  ;;  %v209_v34 = vadd.f32 1e-05, %v201_v32 }
  0xd4   : > { %v195_v36 = vpop.xlane.xlu1 %194  ;;  %v193_v37 = vpop.xlane.xlu0 %192 }
  0xd5   : > { %414 = vrsqrt.f32 %v210_v33  ;;  %v204_v39 = vmul.f32 0.0078125, %v195_v36  ;;  %v203_v40 = vmul.f32 0.0078125, %v193_v37 }
  0xd6   : > { %416 = vrsqrt.f32 %v209_v34 }
  0xd7   : > { %v407_v41 = vpop.eup %406  ;;  %v212_v42 = vadd.f32 1e-05, %v204_v39  ;;  %v211_v43 = vadd.f32 1e-05, %v203_v40 }
  0xd8   : > { %v409_v44 = vpop.eup %408  ;;  %v238_v46 = vmul.f32 %v407_v41, %v230_v35 }
  0xd9   : > { %v236_v48 = vmul.f32 %v409_v44, %v228_v38  ;;  %418 = vrsqrt.f32 %v212_v42 }
  0xda   : > { %246 = vst [vmem:[%s161_s30 + $0x10] sm:$0xff] %v238_v46  ;;  %420 = vrsqrt.f32 %v211_v43 }
  0xdb   : > { %v411_v49 = vpop.eup %410  ;;  %244 = vst [vmem:[%s161_s30] sm:$0xff] %v236_v48 }
  0xdc   : > { %v413_v50 = vpop.eup %412  ;;  %v239_v52 = vmul.f32 %v411_v49, %v231_v45 }
  0xdd   : > { %v237_v54 = vmul.f32 %v413_v50, %v229_v47 }
  0xde   : > { %247 = vst [vmem:[%s161_s30 + $0x18] sm:$0xff] %v239_v52 }
  0xdf   : > { %v415_v55 = vpop.eup %414  ;;  %245 = vst [vmem:[%s161_s30 + $0x8] sm:$0xff] %v237_v54 }
  0xe0   : > { %v417_v56 = vpop.eup %416  ;;  %v241_v58 = vmul.f32 %v415_v55, %v233_v51 }
  0xe1   : > { %v240_v60 = vmul.f32 %v417_v56, %v232_v53 }
  0xe2   : > { %249 = vst [vmem:[%s161_s30 + $0x28] sm:$0xff] %v241_v58 }
  0xe3   : > { %v419_v61 = vpop.eup %418  ;;  %248 = vst [vmem:[%s161_s30 + $0x20] sm:$0xff] %v240_v60 }
  0xe4   : > { %v421_v62 = vpop.eup %420  ;;  %v243_v63 = vmul.f32 %v419_v61, %v235_v57 }
  0xe5   : > { %v242_v0 = vmul.f32 %v421_v62, %v234_v59 }
  0xe6   : > { %251 = vst [vmem:[%s161_s30 + $0x38] sm:$0xff] %v243_v63 }
  0xe7   : > { %250 = vst [vmem:[%s161_s30 + $0x30] sm:$0xff] %v242_v0 }
  0xe8   : > { %465 = shalt.err (!%p462_p1)
}
  0xe9   : > { %s466_s24 = scalar_lea.hbm %s668_s14, 1024  ;;  %s470_s29 = scalar_lea.hbm %s715_s2, 4096 }
  0xea   : > { %p467_p3 = scmp.ne.s32.totalorder %s668_s14, %s466_s24  ;;  %p471_p0 = scmp.lt.u32.totalorder %s668_s14, %s715_s2 }
  0xeb   : > { %p472_p2 = scmp.lt.u32.totalorder %s470_s29, %s466_s24  ;;  %p474_p6 = scmp.lt.u32.totalorder %s466_s24, %s668_s14 }
  0xec   : > { %p468_p4 = pnand %p467_p3, %p722_p10 }
  0xed   : > { %p473_p7 = por %p472_p2, %p471_p0 }
  0xee   : > { %p469_p5 = pneg %p468_p4 }
  0xef   : > { %p475_p11 = por %p474_p6, %p473_p7 }
  0xf1   : > { %p476_p12 = pnand %p475_p11, %p469_p5 }
  0xf3   : > { %479 = shalt.err (!%p476_p12)
}
  0xf4   : > { %s524_s20 = smov 128   ;;  %s525_s28 = smov 8  }
  0xf5   : > { %358 = dma.vmem_to_hbm [thread:$0]  (%p722_p10), %s670_s4, 1024, %s668_s14, %s253_s13, %s524_s20, %s524_s20, %s525_s28  }
  0xf6 PF: > { %p369_p8 = scmp.ge.s32.totalorder %s518_s12, 2  ;;  %s281_s30 = sand.u32 1, %s506_s9  }
  0xf7   : > { %p723_p9 = scmp.ne.s32.totalorder %s720_s22, 0  ;;  %s282_s3 = scalar_lea.sflag [#allocation4], %s281_s30 }
  0xf9   : > { %p365_p13 = pnand %p369_p8, %p723_p9 }
  0xfb   : > { %501 = dma.done.wait (!%p365_p13), %s282_s3, 1024  }
  0xfc   : > { %503 = vsyncadd (!%p365_p13), %s282_s3, 4294966272  ;;  %p15_p1 = scmp.ge.s32.totalorder %s566_s15, 6   ;;  %s724_s9 = smov %s510_s10 }
  0xfd   : > { %s725_s10 = smov %s514_s11  ;;  %s726_s11 = smov %s578_s18 }
  0xfe   : > { %s727_s12 = smov %s566_s15  ;;  %17 = sbr.rel (!%p15_p1) target bundleno = 5 (0x5), region = 73 }
 0x105   :  { %287 = vsyncpa [#allocation3], 1 }
 0x106   :  { %289 = vsyncpa [#allocation3 + $0x1], 1 }
 0x107   :  { %290 = vsyncpa [#allocation4], 1 }
 0x108   :  { %292 = vsyncpa [#allocation4 + $0x1], 1 }

</bundles_post_ra>
